<compile_context>
chip_gen: v6e
topology: v6e:2x2x1
jax: 0.10.0
libtpu: 0.0.40
codegen_flags: <defaults>
</compile_context>

<pallas_src>
import math

import jax
import jax.numpy as jnp
from jax import lax
from jax.experimental import pallas as pl
from jax.experimental.pallas import tpu as pltpu

IN_FEATURES = 3
OUT_FEATURES = 8
N_ROWS = 2  # rows of cat([x1, x2], 0)


def fused_linear_add_kernel(x1_ref, x2_ref, wt_ref, b_ref, out_ref):
    """out = cat(x1, x2) @ W^T + bias + zero_pad(x2)  -- all on the VPU.

    x1_ref, x2_ref : (1, 3)  float32 in SMEM (scalar reads)
    wt_ref         : (3, 8)  float32 in VMEM (weight already transposed)
    b_ref          : (1, 8)  float32 in VMEM
    out_ref        : (2, 8)  float32 in VMEM
    """
    wt = wt_ref[...]                                       # (3, 8)
    lane = lax.broadcasted_iota(jnp.int32, (1, OUT_FEATURES), 1)
    row = lax.broadcasted_iota(jnp.int32, (N_ROWS, OUT_FEATURES), 0)

    # add_vec = bias + zero-padded x2, built incrementally (one (1,8) vreg).
    add_vec = b_ref[...]                                   # (1, 8)
    acc = jnp.zeros((N_ROWS, OUT_FEATURES), jnp.float32)   # (2, 8)

    # Unrolled K=3 multiply-add: 48 MACs total, pure VALU work.
    for k in range(IN_FEATURES):
        wk = wt[k:k + 1, :]                                # (1, 8)
        x1k = x1_ref[0, k]                                 # scalar (SMEM)
        x2k = x2_ref[0, k]                                 # scalar (SMEM)
        # row 0 uses x1[k], row 1 uses x2[k]  (this *is* the concatenate).
        xk = jnp.where(row == 0, x1k, x2k)                 # (2, 8) splat/select
        acc = acc + xk * wk
        # this *is* the zero-pad of x2 to width 8 (columns 3..7 stay 0).
        add_vec = add_vec + jnp.where(lane == k, x2k, jnp.float32(0.0))

    out_ref[...] = (acc + add_vec).astype(out_ref.dtype)   # single (2,8) store


def make_forward(weight, bias):
    """Build the forward fn; transpose/reshape of params happen once here."""
    wt = jnp.asarray(weight).T.astype(jnp.float32)           # (3, 8)
    b2 = jnp.asarray(bias).reshape(1, OUT_FEATURES).astype(jnp.float32)

    cost = pl.CostEstimate(
        flops=2 * N_ROWS * IN_FEATURES * OUT_FEATURES + 2 * N_ROWS * OUT_FEATURES,
        transcendentals=0,
        bytes_accessed=(2 * IN_FEATURES * 4            # x1, x2
                        + IN_FEATURES * OUT_FEATURES * 4  # weight
                        + OUT_FEATURES * 4                # bias
                        + N_ROWS * OUT_FEATURES * 4),     # output
    )

    kernel_call = pl.pallas_call(
        fused_linear_add_kernel,
        out_shape=jax.ShapeDtypeStruct((N_ROWS, OUT_FEATURES), jnp.float32),
        in_specs=[
            pl.BlockSpec(memory_space=pltpu.MemorySpace.SMEM),   # x1 (scalars)
            pl.BlockSpec(memory_space=pltpu.MemorySpace.SMEM),   # x2 (scalars)
            pl.BlockSpec(memory_space=pltpu.MemorySpace.VMEM),   # W^T
            pl.BlockSpec(memory_space=pltpu.MemorySpace.VMEM),   # bias
        ],
        out_specs=pl.BlockSpec(memory_space=pltpu.MemorySpace.VMEM),
        cost_estimate=cost,
    )

    def forward(x1, x2):
        # TODO(synk): the original PyTorch forward computes (2,8) + (1,3),
        # which does not broadcast and raises in PyTorch (module lives under
        # jit_fail/). Surrogate semantics: x2 is zero-padded from width 3 to
        # width 8 and added (broadcast) to BOTH output rows.
        return kernel_call(x1, x2, wt, b2)

    return forward


def init_linear_params(key, in_features, out_features, dtype=jnp.float32):
    """Mimics torch.nn.Linear default init: U(-k, k), k = 1/sqrt(in)."""
    k = 1.0 / math.sqrt(in_features)
    kw, kb = jax.random.split(key)
    weight = jax.random.uniform(
        kw, (out_features, in_features), dtype=dtype, minval=-k, maxval=k
    )
    bias = jax.random.uniform(
        kb, (out_features,), dtype=dtype, minval=-k, maxval=k
    )
    return weight, bias


if __name__ == "__main__":
    root = jax.random.PRNGKey(0)
    k_params, k_x1, k_x2 = jax.random.split(root, 3)

    weight, bias = init_linear_params(k_params, IN_FEATURES, OUT_FEATURES)

    x1 = jax.random.normal(k_x1, (1, IN_FEATURES), dtype=jnp.float32)
    x2 = jax.random.normal(k_x2, (1, IN_FEATURES), dtype=jnp.float32)

    forward = make_forward(weight, bias)
    out = forward(x1, x2)
    out = jax.block_until_ready(out)

    # Pure-JAX reference of the same (surrogate) math.
    x3_ref = jnp.concatenate([x1, x2], axis=0)                    # (2, 3)
    v1_ref = x3_ref @ weight.T + bias                             # (2, 8)
    x2pad_ref = jnp.pad(x2, ((0, 0), (0, OUT_FEATURES - IN_FEATURES)))
    ref = v1_ref + x2pad_ref

    assert out.shape == (N_ROWS, OUT_FEATURES)
    assert jnp.allclose(out, ref, atol=1e-5, rtol=1e-5)

    print("KERNEL_OK")
</pallas_src>

<mosaic_0001>
module attributes {stable_mosaic.version = 11 : i64} {
  func.func @fused_linear_add_kernel(%arg0: memref<1x3xf32, #tpu.memory_space<smem>>, %arg1: memref<1x3xf32, #tpu.memory_space<smem>>, %arg2: memref<3x8xf32, #tpu.memory_space<vmem>>, %arg3: memref<1x8xf32, #tpu.memory_space<vmem>>, %arg4: memref<2x8xf32, #tpu.memory_space<vmem>>) attributes {dimension_semantics = [], scalar_prefetch = 0 : i64, scratch_operands = 0 : i64, tpu.core_type = #tpu.core_type<tc>} {
    %c0 = arith.constant 0 : index
    %c0_0 = arith.constant 0 : index
    %0 = vector.load %arg2[%c0, %c0_0] : memref<3x8xf32, #tpu.memory_space<vmem>>, vector<3x8xf32>
    %1 = tpu.iota {dimensions = array<i32: 1>} : vector<1x8xi32>
    %2 = tpu.iota {dimensions = array<i32: 0>} : vector<2x8xi32>
    %c0_1 = arith.constant 0 : index
    %c0_2 = arith.constant 0 : index
    %3 = vector.load %arg3[%c0_1, %c0_2] : memref<1x8xf32, #tpu.memory_space<vmem>>, vector<1x8xf32>
    %cst = arith.constant 0.000000e+00 : f32
    %4 = vector.broadcast %cst : f32 to vector<2x8xf32>
    %5 = vector.extract_strided_slice %0 {offsets = [0, 0], sizes = [1, 8], strides = [1, 1]} : vector<3x8xf32> to vector<1x8xf32>
    %c0_3 = arith.constant 0 : index
    %c0_4 = arith.constant 0 : index
    %6 = memref.load %arg0[%c0_3, %c0_4] : memref<1x3xf32, #tpu.memory_space<smem>>
    %c0_5 = arith.constant 0 : index
    %c0_6 = arith.constant 0 : index
    %7 = memref.load %arg1[%c0_5, %c0_6] : memref<1x3xf32, #tpu.memory_space<smem>>
    %c0_i32 = arith.constant 0 : i32
    %8 = vector.broadcast %c0_i32 : i32 to vector<2x8xi32>
    %9 = arith.cmpi eq, %2, %8 : vector<2x8xi32>
    %10 = vector.broadcast %6 : f32 to vector<2x8xf32>
    %11 = vector.broadcast %7 : f32 to vector<2x8xf32>
    %12 = arith.select %9, %10, %11 : vector<2x8xi1>, vector<2x8xf32>
    %13 = vector.broadcast %5 : vector<1x8xf32> to vector<2x8xf32>
    %14 = arith.mulf %12, %13 : vector<2x8xf32>
    %15 = arith.addf %4, %14 : vector<2x8xf32>
    %c0_i32_7 = arith.constant 0 : i32
    %16 = vector.broadcast %c0_i32_7 : i32 to vector<1x8xi32>
    %17 = arith.cmpi eq, %1, %16 : vector<1x8xi32>
    %cst_8 = arith.constant 0.000000e+00 : f32
    %18 = vector.broadcast %7 : f32 to vector<1x8xf32>
    %19 = vector.broadcast %cst_8 : f32 to vector<1x8xf32>
    %20 = arith.select %17, %18, %19 : vector<1x8xi1>, vector<1x8xf32>
    %21 = arith.addf %3, %20 : vector<1x8xf32>
    %22 = vector.extract_strided_slice %0 {offsets = [1, 0], sizes = [1, 8], strides = [1, 1]} : vector<3x8xf32> to vector<1x8xf32>
    %c0_9 = arith.constant 0 : index
    %c1 = arith.constant 1 : index
    %23 = memref.load %arg0[%c0_9, %c1] : memref<1x3xf32, #tpu.memory_space<smem>>
    %c0_10 = arith.constant 0 : index
    %c1_11 = arith.constant 1 : index
    %24 = memref.load %arg1[%c0_10, %c1_11] : memref<1x3xf32, #tpu.memory_space<smem>>
    %c0_i32_12 = arith.constant 0 : i32
    %25 = vector.broadcast %c0_i32_12 : i32 to vector<2x8xi32>
    %26 = arith.cmpi eq, %2, %25 : vector<2x8xi32>
    %27 = vector.broadcast %23 : f32 to vector<2x8xf32>
    %28 = vector.broadcast %24 : f32 to vector<2x8xf32>
    %29 = arith.select %26, %27, %28 : vector<2x8xi1>, vector<2x8xf32>
    %30 = vector.broadcast %22 : vector<1x8xf32> to vector<2x8xf32>
    %31 = arith.mulf %29, %30 : vector<2x8xf32>
    %32 = arith.addf %15, %31 : vector<2x8xf32>
    %c1_i32 = arith.constant 1 : i32
    %33 = vector.broadcast %c1_i32 : i32 to vector<1x8xi32>
    %34 = arith.cmpi eq, %1, %33 : vector<1x8xi32>
    %cst_13 = arith.constant 0.000000e+00 : f32
    %35 = vector.broadcast %24 : f32 to vector<1x8xf32>
    %36 = vector.broadcast %cst_13 : f32 to vector<1x8xf32>
    %37 = arith.select %34, %35, %36 : vector<1x8xi1>, vector<1x8xf32>
    %38 = arith.addf %21, %37 : vector<1x8xf32>
    %39 = vector.extract_strided_slice %0 {offsets = [2, 0], sizes = [1, 8], strides = [1, 1]} : vector<3x8xf32> to vector<1x8xf32>
    %c0_14 = arith.constant 0 : index
    %c2 = arith.constant 2 : index
    %40 = memref.load %arg0[%c0_14, %c2] : memref<1x3xf32, #tpu.memory_space<smem>>
    %c0_15 = arith.constant 0 : index
    %c2_16 = arith.constant 2 : index
    %41 = memref.load %arg1[%c0_15, %c2_16] : memref<1x3xf32, #tpu.memory_space<smem>>
    %c0_i32_17 = arith.constant 0 : i32
    %42 = vector.broadcast %c0_i32_17 : i32 to vector<2x8xi32>
    %43 = arith.cmpi eq, %2, %42 : vector<2x8xi32>
    %44 = vector.broadcast %40 : f32 to vector<2x8xf32>
    %45 = vector.broadcast %41 : f32 to vector<2x8xf32>
    %46 = arith.select %43, %44, %45 : vector<2x8xi1>, vector<2x8xf32>
    %47 = vector.broadcast %39 : vector<1x8xf32> to vector<2x8xf32>
    %48 = arith.mulf %46, %47 : vector<2x8xf32>
    %49 = arith.addf %32, %48 : vector<2x8xf32>
    %c2_i32 = arith.constant 2 : i32
    %50 = vector.broadcast %c2_i32 : i32 to vector<1x8xi32>
    %51 = arith.cmpi eq, %1, %50 : vector<1x8xi32>
    %cst_18 = arith.constant 0.000000e+00 : f32
    %52 = vector.broadcast %41 : f32 to vector<1x8xf32>
    %53 = vector.broadcast %cst_18 : f32 to vector<1x8xf32>
    %54 = arith.select %51, %52, %53 : vector<1x8xi1>, vector<1x8xf32>
    %55 = arith.addf %38, %54 : vector<1x8xf32>
    %56 = vector.broadcast %55 : vector<1x8xf32> to vector<2x8xf32>
    %57 = arith.addf %49, %56 : vector<2x8xf32>
    %c0_19 = arith.constant 0 : index
    %c0_20 = arith.constant 0 : index
    %58 = vector.load %arg4[%c0_19, %c0_20] : memref<2x8xf32, #tpu.memory_space<vmem>>, vector<2x8xf32>
    tpu.vector_store %arg4[%c0_19, %c0_20], %57 {strides = array<i32>} : memref<2x8xf32, #tpu.memory_space<vmem>>, vector<2x8xf32>,
    return
  }
}

</mosaic_0001>

<bundles_post_ra>
// kernel: tpu_custom_call.1
= control target key start
LH: loop header
LB: loop body
LE: loop exit
PB: predicated region body
PF: predicated region fallthrough
CT: control target
= control target key end

     0   :  { %9 = vsyncpa [#allocation5], 0  ;;  %s251_s0 = inlined_call_operand.hbm [shape: f32[1,3], index: 0, kind: input, shape index: {}]   ;;  %s252_s1 = inlined_call_operand.vmem [shape: f32[1,3], index: 1, kind: input, shape index: {}]   ;;  %s253_s2 = inlined_call_operand.hbm [shape: f32[3,8], index: 2, kind: input, shape index: {}]   ;;  %s254_s3 = inlined_call_operand.vmem [shape: f32[1,8], index: 3, kind: input, shape index: {}]   ;;  %s255_s4 = inlined_call_operand.hbm [shape: f32[2,8], index: 4, kind: output, shape index: {}]  }
   0x1   :  { %10 = vsyncpa [#allocation6], 0 }
   0x2   :  { %11 = vsyncpa [#allocation3], 0 }
   0x3   :  { %12 = vsyncpa [#allocation4], 0  ;;  %s27_s17 = sshll.u32 %s252_s1, 4  ;;  %s204_s18 = smov [#allocation2]   ;;  %s28_s17 = int_to_ptr.vmem [resolvable:$true] %s27_s17 }
   0x4   :  { %20 = dma.hbm_to_smem %s251_s0, 16, %s204_s18, [#allocation5]  }
   0x5   :  { %s144_s21 = scalar_lea.vmem %s28_s17, 16  ;;  %p149_p1 = scmp.lt.s32.totalorder %s28_s17, %s28_s17 }
   0x6   :  { %p145_p0 = scmp.ne.s32.totalorder %s28_s17, %s144_s21  ;;  %p150_p2 = scmp.lt.s32.totalorder %s144_s21, %s144_s21 }
   0x8   :  { %p151_p3 = por %p150_p2, %p149_p1 }
   0xa   :  { %p152_p4 = pnand %p151_p3, %p145_p0 }
   0xc   :  { %155 = shalt.err (!%p152_p4)
}
   0xd   :  { %s205_s22 = smov [#allocation7]   ;;  %s206_s23 = smov [#allocation8]  }
   0xe   :  { %30 = dma.vmem_to_smem %s28_s17, 16, %s205_s22, [#allocation6]  }
   0xf   :  { %s37_s24 = sshll.u32 %s206_s23, 4  ;;  %s38_s24 = int_to_ptr.vmem [resolvable:$true] %s37_s24 }
  0x10   :  { %s164_s25 = scalar_lea.vmem %s38_s24, 64  ;;  %p169_p6 = scmp.lt.s32.totalorder %s38_s24, %s38_s24 }
  0x11   :  { %p165_p5 = scmp.ne.s32.totalorder %s38_s24, %s164_s25  ;;  %p170_p7 = scmp.lt.s32.totalorder %s164_s25, %s164_s25 }
  0x13   :  { %p171_p8 = por %p170_p7, %p169_p6 }
  0x15   :  { %p172_p9 = pnand %p171_p8, %p165_p5 }
  0x17   :  { %175 = shalt.err (!%p172_p9)
}
  0x18   :  { %40 = dma.hbm_to_vmem [thread:$0]  %s253_s2, 64, %s38_s24, [#allocation3]  }
  0x19   :  { %196 = dma.done.wait [#allocation5], 16  }
  0x1a   :  { %197 = vsyncadd [#allocation5], 4294967280 }
  0x1b   :  { %198 = dma.done.wait [#allocation6], 16  }
  0x1c   :  { %199 = vsyncadd [#allocation6], 4294967280 }
  0x1d   :  { %200 = dma.done.wait [#allocation3], 64  }
  0x1e   :  { %201 = vsyncadd [#allocation3], 4294967232 }
  0x1f   :  { %52 = sfence }
  0x20   :  { %v54_v0 = vlaneseq  ;;  %s59_s26 = sld [smem:[#allocation2]]  ;;  %v53_v3 = vld [vmem:[#allocation8] sm:$0x7]  ;;  %vm109_vm4 = vcmask 58368  }
  0x21   :  { %s60_s27 = sld [smem:[#allocation7]]  ;;  %v58_v7 = vld [vmem:[%s254_s3] sm:$0x1]  ;;  %s207_s3 = smov [#allocation9]  }
  0x22   :  { %v55_v1 = vand.u32 127, %v54_v0  ;;  %v57_v2 = vshrl.u32 %v54_v0, 7  ;;  %s128_s28 = sld [smem:[#allocation2 + $0x1]]  ;;  %s117_s7 = sshll.u32 %s207_s3, 4  ;;  %s118_s7 = int_to_ptr.vmem [resolvable:$true] %s117_s7 }
  0x23   :  { %s129_s29 = sld [smem:[#allocation7 + $0x1]]  ;;  %s176_s8 = scalar_lea.vmem %s118_s7, 32 }
  0x24   :  { %v67_v4 = vsub.s32 0, %v57_v2  ;;  %v81_v5 = vsub.s32 1, %v57_v2  ;;  %s130_s30 = sld [smem:[#allocation2 + $0x2]]  ;;  %vm61_vm0 = vcmp.eq.s32.totalorder %v57_v2, 0  ;;  %vm71_vm1 = vcmp.eq.s32.totalorder %v55_v1, 0  ;;  %p177_p10 = scmp.ne.s32.totalorder %s118_s7, %s176_s8 }
  0x25   :  { %s131_s2 = sld [smem:[#allocation7 + $0x2]]  ;;  %v95_v6 = vsub.s32 2, %v57_v2  ;;  %vm85_vm2 = vcmp.eq.s32.totalorder %v55_v1, 1  ;;  %vm99_vm3 = vcmp.eq.s32.totalorder %v55_v1, 2  ;;  %p181_p11 = scmp.lt.s32.totalorder %s118_s7, %s118_s7 }
  0x26   :  { %v62_v8 = vstv %s59_s26  ;;  %v68_v9 = vrot.slane %v53_v3, %v67_v4  ;;  %v82_v11 = vrot.slane %v53_v3, %v81_v5  ;;  %p182_p12 = scmp.lt.s32.totalorder %s176_s8, %s176_s8 }
  0x27   :  { %v63_v10 = vstv %s60_s27  ;;  %v96_v18 = vrot.slane %v53_v3, %v95_v6 }
  0x28   :  { %v64_v12 = vsel %vm61_vm0, %v62_v8, %v63_v10  ;;  %v72_v13 = vsel %vm71_vm1, %v63_v10, 0.0  ;;  %v76_v14 = vstv %s128_s28  ;;  %p183_p13 = por %p182_p12, %p181_p11 }
  0x29   :  { %v69_v15 = vmul.f32 %v68_v9, %v64_v12  ;;  %v73_v16 = vadd.f32 %v72_v13, %v58_v7  ;;  %v77_v17 = vstv %s129_s29 }
  0x2a   :  { %v78_v19 = vsel %vm61_vm0, %v76_v14, %v77_v17  ;;  %v86_v20 = vsel %vm85_vm2, %v77_v17, 0.0  ;;  %v90_v21 = vstv %s130_s30  ;;  %p184_p0 = pnand %p183_p13, %p177_p10 }
  0x2b   :  { %v83_v22 = vmul.f32 %v82_v11, %v78_v19  ;;  %v87_v23 = vadd.f32 %v86_v20, %v73_v16  ;;  %v91_v24 = vstv %s131_s2 }
  0x2c   :  { %v92_v25 = vsel %vm61_vm0, %v90_v21, %v91_v24  ;;  %v100_v26 = vsel %vm99_vm3, %v91_v24, 0.0 }
  0x2d   :  { %v84_v27 = vadd.f32 %v83_v22, %v69_v15  ;;  %v97_v28 = vmul.f32 %v96_v18, %v92_v25  ;;  %v101_v29 = vadd.f32 %v100_v26, %v87_v23 }
  0x2f   :  { %v98_v30 = vadd.f32 %v97_v28, %v84_v27  ;;  %v106_v31 = vrot.slane %v101_v29, %v67_v4 }
  0x31   :  { %v108_v32 = vadd.f32 %v106_v31, %v98_v30 }
  0x33   :  { %110 = vst.msk [vmem:[#allocation9] sm:$0x3] %vm109_vm4, %v108_v32 }
  0x34   :  { %187 = shalt.err (!%p184_p0)
}
  0x35   :  { %120 = dma.vmem_to_hbm [thread:$0]  %s118_s7, 32, %s255_s4, [#allocation4]  }
  0x36   :  { %202 = dma.done.wait [#allocation4], 32  }
  0x37   :  { %203 = vsyncadd [#allocation4], 4294967264 }
  0x38   :  { %124 = vsyncpa [#allocation3], 1 }
  0x39   :  { %125 = vsyncpa [#allocation4], 1 }
  0x3a   :  { %126 = vsyncpa [#allocation5], 1 }
  0x3b   :  { %127 = vsyncpa [#allocation6], 1 }

</bundles_post_ra>
